<compile_context>
chip_gen: v7x
topology: tpu7x:2x2x1
jax: 0.10.0
libtpu: 0.0.40
codegen_flags: <defaults>
</compile_context>

<pallas_src>
import functools
import math

import jax
import jax.numpy as jnp
from jax.experimental import pallas as pl
from jax.experimental.pallas import tpu as pltpu

_LANE = 128


def _sage_layer_kernel(mask_ref, a_ref, xk_ref, xi_ref, w_ref, b_ref,
                       o_ref, acc_ref, *, apply_relu):
    i = pl.program_id(0)
    k = pl.program_id(1)
    n_k = pl.num_programs(1)

    # Init the aggregation accumulator at the start of the reduction.
    @pl.when(k == 0)
    def _():
        acc_ref[...] = jnp.zeros_like(acc_ref)

    # Accumulate A[i-tile, k-tile] @ x[k-tile]; skip tiles with no edges.
    @pl.when(mask_ref[i * n_k + k] != 0)
    def _():
        acc_ref[...] += jnp.dot(a_ref[...], xk_ref[...],
                                preferred_element_type=jnp.float32)

    # Finalize: fused [agg, x_self] @ [Wl; Wr] + b, (relu), store.
    @pl.when(k == n_k - 1)
    def _():
        agg = acc_ref[...].astype(jnp.bfloat16)                 # [TM, Fin]
        feat = jnp.concatenate([agg, xi_ref[...]], axis=-1)     # [TM, 2*Fin]
        out = jnp.dot(feat, w_ref[...],
                      preferred_element_type=jnp.float32)       # [TM, Fout]
        out = out + b_ref[...]                                  # f32 epilogue
        if apply_relu:
            out = jnp.maximum(out, 0.0)
        o_ref[...] = out.astype(o_ref.dtype)


def _sage_layer(a_pad, block_mask, x_pad, w_stacked, bias, *, apply_relu, tm, tk):
    """One SAGEConv layer: out = (A @ x) @ Wl + x @ Wr + b, padded shapes."""
    npad = a_pad.shape[0]
    fin = x_pad.shape[1]
    fout = w_stacked.shape[1]
    assert w_stacked.shape[0] == 2 * fin
    n_i, n_k = npad // tm, npad // tk

    kernel = functools.partial(_sage_layer_kernel, apply_relu=apply_relu)
    grid_spec = pltpu.PrefetchScalarGridSpec(
        num_scalar_prefetch=1,
        grid=(n_i, n_k),
        in_specs=[
            pl.BlockSpec((tm, tk), lambda i, k, m: (i, k)),          # A tile
            pl.BlockSpec((tk, fin), lambda i, k, m: (k, 0)),         # x rows (reduction)
            pl.BlockSpec((tm, fin), lambda i, k, m: (i, 0)),         # x self rows (root)
            pl.BlockSpec((2 * fin, fout), lambda i, k, m: (0, 0)),   # [Wl; Wr], resident
            pl.BlockSpec((1, fout), lambda i, k, m: (0, 0)),         # bias, resident
        ],
        out_specs=pl.BlockSpec((tm, fout), lambda i, k, m: (i, 0)),
        scratch_shapes=[pltpu.VMEM((tm, fin), jnp.float32)],
    )
    return pl.pallas_call(
        kernel,
        out_shape=jax.ShapeDtypeStruct((npad, fout), jnp.float32),
        grid_spec=grid_spec,
        compiler_params=pltpu.CompilerParams(
            dimension_semantics=("parallel", "arbitrary"),
            vmem_limit_bytes=32 * 1024 * 1024,
        ),
    )(block_mask, a_pad, x_pad, x_pad, w_stacked, bias)


def graphsage_forward(x, edge_index, params, *, tm=128, tk=128):
    """x: [N, F] float32, edge_index: [2, E] int32 (row 0 = src, row 1 = dst)."""
    N, F = x.shape
    wl1, wr1, b1, wl2, wr2, b2 = params
    H = wl1.shape[1]
    C = wl2.shape[1]

    def rup(v, m):
        return ((v + m - 1) // m) * m

    npad = rup(N, math.lcm(tm, tk))
    fp, hp, cp = rup(F, _LANE), rup(H, _LANE), rup(C, _LANE)

    # Dense mean-aggregation matrix (padded rows/cols are all-zero), bf16 for HBM/MXU.
    src, dst = edge_index[0], edge_index[1]
    adj = jnp.zeros((npad, npad), jnp.float32).at[dst, src].add(1.0)
    deg = adj.sum(axis=1, keepdims=True)
    a_mean = (adj / jnp.maximum(deg, 1.0)).astype(jnp.bfloat16)

    # Per-tile occupancy mask (sparsity skip), scalar-prefetched into SMEM.
    n_i, n_k = npad // tm, npad // tk
    block_mask = (a_mean.reshape(n_i, tm, n_k, tk) != 0).any(axis=(1, 3))
    block_mask = block_mask.astype(jnp.int32).reshape(-1)

    def pad2(w, r, c):
        return jnp.zeros((r, c), jnp.float32).at[: w.shape[0], : w.shape[1]].set(w)

    x_pad = pad2(x, npad, fp).astype(jnp.bfloat16)
    w1 = jnp.concatenate([pad2(wl1, fp, hp), pad2(wr1, fp, hp)], axis=0).astype(jnp.bfloat16)
    b1p = pad2(b1, 1, hp)
    w2 = jnp.concatenate([pad2(wl2, hp, cp), pad2(wr2, hp, cp)], axis=0).astype(jnp.bfloat16)
    b2p = pad2(b2, 1, cp)

    # conv1 + relu
    h = _sage_layer(a_mean, block_mask, x_pad, w1, b1p, apply_relu=True, tm=tm, tk=tk)
    # TODO(synk): dropout(p=0.5) is identity in eval mode; training mode would use
    # pltpu.prng_seed + pltpu.prng_random_bits for the mask inside the kernel.
    # conv2
    out = _sage_layer(a_mean, block_mask, h.astype(jnp.bfloat16), w2, b2p,
                      apply_relu=False, tm=tm, tk=tk)
    return out[:N, :C]


def init_params(key, num_features, hidden_channels, num_classes):
    """Deterministic init. Weights stored transposed ([in, out]) for x @ W."""
    ks = jax.random.split(key, 6)

    def lin(k, fan_in, fan_out):
        bound = 1.0 / jnp.sqrt(jnp.asarray(fan_in, jnp.float32))
        return jax.random.uniform(k, (fan_in, fan_out), jnp.float32, -bound, bound)

    wl1 = lin(ks[0], num_features, hidden_channels)   # conv1.lin_l.weight^T
    wr1 = lin(ks[1], num_features, hidden_channels)   # conv1.lin_r.weight^T
    b1 = jax.random.uniform(ks[2], (1, hidden_channels), jnp.float32, -0.1, 0.1)
    wl2 = lin(ks[3], hidden_channels, num_classes)    # conv2.lin_l.weight^T
    wr2 = lin(ks[4], hidden_channels, num_classes)    # conv2.lin_r.weight^T
    b2 = jax.random.uniform(ks[5], (1, num_classes), jnp.float32, -0.1, 0.1)
    return (wl1, wr1, b1, wl2, wr2, b2)


if __name__ == "__main__":
    num_nodes = 32
    num_edges = 96
    num_features = 16
    hidden_channels = 32
    num_classes = 8

    key = jax.random.PRNGKey(0)
    k_x, k_e1, k_e2, k_p = jax.random.split(key, 4)

    x = jax.random.normal(k_x, (num_nodes, num_features), jnp.float32)
    src = jax.random.randint(k_e1, (num_edges,), 0, num_nodes, jnp.int32)
    dst = jax.random.randint(k_e2, (num_edges,), 0, num_nodes, jnp.int32)
    edge_index = jnp.stack([src, dst], axis=0)                    # [2, E]

    params = init_params(k_p, num_features, hidden_channels, num_classes)

    out = graphsage_forward(x, edge_index, params)
    jax.block_until_ready(out)
    assert out.shape == (num_nodes, num_classes)
    print("KERNEL_OK")
</pallas_src>

<mosaic_0001>
module attributes {stable_mosaic.version = 11 : i64} {
  func.func @_sage_layer_kernel(%arg0: i32, %arg1: i32, %arg2: memref<1xi32, #tpu.memory_space<smem>>, %arg3: memref<128x128xbf16, #tpu.memory_space<vmem>>, %arg4: memref<128x128xbf16, #tpu.memory_space<vmem>>, %arg5: memref<128x128xbf16, #tpu.memory_space<vmem>>, %arg6: memref<256x128xbf16, #tpu.memory_space<vmem>>, %arg7: memref<1x128xf32, #tpu.memory_space<vmem>>, %arg8: memref<128x128xf32, #tpu.memory_space<vmem>>, %arg9: memref<128x128xf32, #tpu.memory_space<vmem>>) attributes {dimension_semantics = [#tpu.dimension_semantics<parallel>, #tpu.dimension_semantics<arbitrary>], iteration_bounds = array<i64: 1, 1>, scalar_prefetch = 1 : i64, scratch_operands = 1 : i64, tpu.core_type = #tpu.core_type<tc>, window_params = [{transform_indices = @transform_0, window_bounds = array<i64: 128, 128>}, {transform_indices = @transform_1, window_bounds = array<i64: 128, 128>}, {transform_indices = @transform_2, window_bounds = array<i64: 128, 128>}, {pipeline_mode = #tpu.pipeline_mode<synchronous>, transform_indices = @transform_3, window_bounds = array<i64: 256, 128>}, {pipeline_mode = #tpu.pipeline_mode<synchronous>, transform_indices = @transform_4, window_bounds = array<i64: 1, 128>}, {transform_indices = @transform_5, window_bounds = array<i64: 128, 128>}]} {
    %c0_i32 = arith.constant 0 : i32
    %0 = arith.cmpi eq, %arg1, %c0_i32 : i32
    %1 = arith.extui %0 : i1 to i32
    %c0_i32_0 = arith.constant 0 : i32
    %2 = arith.cmpi ne, %1, %c0_i32_0 : i32
    scf.if %2 {
      %cst = arith.constant 0.000000e+00 : f32
      %13 = vector.broadcast %cst : f32 to vector<128x128xf32>
      %c0 = arith.constant 0 : index
      %c0_5 = arith.constant 0 : index
      %14 = vector.load %arg9[%c0, %c0_5] : memref<128x128xf32, #tpu.memory_space<vmem>>, vector<128x128xf32>
      tpu.vector_store %arg9[%c0, %c0_5], %13 {strides = array<i32>} : memref<128x128xf32, #tpu.memory_space<vmem>>, vector<128x128xf32>,
    } else {
    }
    %c1_i32 = arith.constant 1 : i32
    %3 = arith.muli %arg0, %c1_i32 : i32
    %4 = arith.addi %3, %arg1 : i32
    %5 = arith.index_cast %4 : i32 to index
    %6 = memref.load %arg2[%5] : memref<1xi32, #tpu.memory_space<smem>>
    %c0_i32_1 = arith.constant 0 : i32
    %7 = arith.cmpi ne, %6, %c0_i32_1 : i32
    %8 = arith.extui %7 : i1 to i32
    %c0_i32_2 = arith.constant 0 : i32
    %9 = arith.cmpi ne, %8, %c0_i32_2 : i32
    scf.if %9 {
      %c0 = arith.constant 0 : index
      %c0_5 = arith.constant 0 : index
      %13 = vector.load %arg9[%c0, %c0_5] : memref<128x128xf32, #tpu.memory_space<vmem>>, vector<128x128xf32>
      %c0_6 = arith.constant 0 : index
      %c0_7 = arith.constant 0 : index
      %14 = vector.load %arg3[%c0_6, %c0_7] : memref<128x128xbf16, #tpu.memory_space<vmem>>, vector<128x128xbf16>
      %c0_8 = arith.constant 0 : index
      %c0_9 = arith.constant 0 : index
      %15 = vector.load %arg4[%c0_8, %c0_9] : memref<128x128xbf16, #tpu.memory_space<vmem>>, vector<128x128xbf16>
      %cst = arith.constant dense<0.000000e+00> : vector<128x128xf32>
      %16 = tpu.matmul %14, %15, %cst {dimension_numbers = #tpu.dot_dimension_numbers<[1], [0], [0], [1], [0, 0, 1, 1], [], []>} : vector<128x128xbf16>, vector<128x128xbf16>, vector<128x128xf32> -> vector<128x128xf32>
      %17 = arith.addf %13, %16 : vector<128x128xf32>
      %c0_10 = arith.constant 0 : index
      %c0_11 = arith.constant 0 : index
      %18 = vector.load %arg9[%c0_10, %c0_11] : memref<128x128xf32, #tpu.memory_space<vmem>>, vector<128x128xf32>
      tpu.vector_store %arg9[%c0_10, %c0_11], %17 {strides = array<i32>} : memref<128x128xf32, #tpu.memory_space<vmem>>, vector<128x128xf32>,
    } else {
    }
    %c0_i32_3 = arith.constant 0 : i32
    %10 = arith.cmpi eq, %arg1, %c0_i32_3 : i32
    %11 = arith.extui %10 : i1 to i32
    %c0_i32_4 = arith.constant 0 : i32
    %12 = arith.cmpi ne, %11, %c0_i32_4 : i32
    scf.if %12 {
      %c0 = arith.constant 0 : index
      %c0_5 = arith.constant 0 : index
      %13 = vector.load %arg9[%c0, %c0_5] : memref<128x128xf32, #tpu.memory_space<vmem>>, vector<128x128xf32>
      %14 = arith.truncf %13 : vector<128x128xf32> to vector<128x128xbf16>
      %c0_6 = arith.constant 0 : index
      %c0_7 = arith.constant 0 : index
      %15 = vector.load %arg5[%c0_6, %c0_7] : memref<128x128xbf16, #tpu.memory_space<vmem>>, vector<128x128xbf16>
      %16 = tpu.concatenate %14, %15 in 1 : vector<128x128xbf16>, vector<128x128xbf16> -> vector<128x256xbf16>
      %c0_8 = arith.constant 0 : index
      %c0_9 = arith.constant 0 : index
      %17 = vector.load %arg6[%c0_8, %c0_9] : memref<256x128xbf16, #tpu.memory_space<vmem>>, vector<256x128xbf16>
      %cst = arith.constant dense<0.000000e+00> : vector<128x128xf32>
      %18 = tpu.matmul %16, %17, %cst {dimension_numbers = #tpu.dot_dimension_numbers<[1], [0], [0], [1], [0, 0, 1, 1], [], []>} : vector<128x256xbf16>, vector<256x128xbf16>, vector<128x128xf32> -> vector<128x128xf32>
      %c0_10 = arith.constant 0 : index
      %c0_11 = arith.constant 0 : index
      %19 = vector.load %arg7[%c0_10, %c0_11] : memref<1x128xf32, #tpu.memory_space<vmem>>, vector<1x128xf32>
      %20 = vector.broadcast %19 : vector<1x128xf32> to vector<128x128xf32>
      %21 = arith.addf %18, %20 : vector<128x128xf32>
      %cst_12 = arith.constant 0.000000e+00 : f32
      %22 = vector.broadcast %cst_12 : f32 to vector<128x128xf32>
      %23 = arith.maximumf %21, %22 : vector<128x128xf32>
      %c0_13 = arith.constant 0 : index
      %c0_14 = arith.constant 0 : index
      %24 = vector.load %arg8[%c0_13, %c0_14] : memref<128x128xf32, #tpu.memory_space<vmem>>, vector<128x128xf32>
      tpu.vector_store %arg8[%c0_13, %c0_14], %23 {strides = array<i32>} : memref<128x128xf32, #tpu.memory_space<vmem>>, vector<128x128xf32>,
    } else {
    }
    return
  }
  func.func @transform_0(%arg0: i32, %arg1: i32, %arg2: memref<1xi32, #tpu.memory_space<smem>>) -> (i32, i32) {
    %c0_i32 = arith.constant 0 : i32
    return %arg0, %arg1 : i32, i32
  }
  func.func @transform_1(%arg0: i32, %arg1: i32, %arg2: memref<1xi32, #tpu.memory_space<smem>>) -> (i32, i32) {
    %c0_i32 = arith.constant 0 : i32
    %c0_i32_0 = arith.constant 0 : i32
    return %arg1, %c0_i32 : i32, i32
  }
  func.func @transform_2(%arg0: i32, %arg1: i32, %arg2: memref<1xi32, #tpu.memory_space<smem>>) -> (i32, i32) {
    %c0_i32 = arith.constant 0 : i32
    %c0_i32_0 = arith.constant 0 : i32
    return %arg0, %c0_i32 : i32, i32
  }
  func.func @transform_3(%arg0: i32, %arg1: i32, %arg2: memref<1xi32, #tpu.memory_space<smem>>) -> (i32, i32) {
    %c0_i32 = arith.constant 0 : i32
    %c0_i32_0 = arith.constant 0 : i32
    %c0_i32_1 = arith.constant 0 : i32
    return %c0_i32, %c0_i32_0 : i32, i32
  }
  func.func @transform_4(%arg0: i32, %arg1: i32, %arg2: memref<1xi32, #tpu.memory_space<smem>>) -> (i32, i32) {
    %c0_i32 = arith.constant 0 : i32
    %c0_i32_0 = arith.constant 0 : i32
    %c0_i32_1 = arith.constant 0 : i32
    return %c0_i32, %c0_i32_0 : i32, i32
  }
  func.func @transform_5(%arg0: i32, %arg1: i32, %arg2: memref<1xi32, #tpu.memory_space<smem>>) -> (i32, i32) {
    %c0_i32 = arith.constant 0 : i32
    %c0_i32_0 = arith.constant 0 : i32
    return %arg0, %c0_i32 : i32, i32
  }
}

</mosaic_0001>

<bundles_post_ra>
// kernel: tpu_custom_call.1
= control target key start
LH: loop header
LB: loop body
LE: loop exit
PB: predicated region body
PF: predicated region fallthrough
CT: control target
= control target key end

     0   :  { %12 = vsyncpa [#allocation6], 0  ;;  %s1261_s0 = inlined_call_operand.<no memory space> [shape: s32[1], index: 0, kind: input, shape index: {}]   ;;  %s1262_s1 = inlined_call_operand.hbm [shape: bf16[128,128], index: 1, kind: input, shape index: {}]   ;;  %s1263_s2 = inlined_call_operand.hbm [shape: bf16[128,128], index: 2, kind: input, shape index: {}]   ;;  %s1264_s3 = inlined_call_operand.hbm [shape: bf16[128,128], index: 3, kind: input, shape index: {}]   ;;  %s1265_s4 = inlined_call_operand.hbm [shape: bf16[256,128], index: 4, kind: input, shape index: {}]   ;;  %s1266_s5 = inlined_call_operand.vmem [shape: f32[1,128], index: 5, kind: input, shape index: {}]   ;;  %s1267_s6 = inlined_call_operand.hbm [shape: f32[128,128], index: 6, kind: output, shape index: {}]  }
   0x1   :  { %13 = vsyncpa [#allocation9], 0 }
   0x2   :  { %14 = vsyncpa [#allocation12], 0 }
   0x3   :  { %15 = vsyncpa [#allocation7], 0  ;;  %s1106_s21 = smov [#allocation8]   ;;  %s1107_s23 = smov [#allocation5]  }
   0x4   :  { %s33_s22 = sshll.u32 %s1106_s21, 4  ;;  %s21_s24 = sshll.u32 %s1107_s23, 4  ;;  %s34_s22 = int_to_ptr.vmem [resolvable:$true] %s33_s22  ;;  %s1151_s24 = int_to_ptr.vmem [resolvable:$true] %s21_s24 }
   0x5   :  { %s988_s27 = scalar_lea.hbm %s1263_s2, 1024 }
   0x6   :  { %p989_p0 = scmp.ne.s32.totalorder %s1263_s2, %s988_s27  ;;  %p992_p1 = scmp.lt.u32.totalorder %s988_s27, %s1263_s2 }
   0x8   :  { %p994_p2 = pnand %p992_p1, %p989_p0 }
   0xa   :  { %997 = shalt.err (!%p994_p2)
}
   0xb   :  { %s998_s8 = scalar_lea.vmem %s34_s22, 1024  ;;  %p1003_p4 = scmp.lt.s32.totalorder %s34_s22, %s34_s22 }
   0xc   :  { %p999_p3 = scmp.ne.s32.totalorder %s34_s22, %s998_s8  ;;  %p1004_p5 = scmp.lt.s32.totalorder %s998_s8, %s998_s8 }
   0xe   :  { %p1005_p6 = por %p1004_p5, %p1003_p4 }
  0x10   :  { %p1006_p7 = pnand %p1005_p6, %p999_p3 }
  0x12   :  { %1009 = shalt.err (!%p1006_p7)
}
  0x13   :  { %s1108_s9 = smov 64   ;;  %s1109_s10 = smov 4  }
  0x14   :  { %39 = dma.hbm_to_vmem [thread:$0]  %s1263_s2, 1024, %s34_s22, [#allocation9], %s1108_s9, %s1108_s9, %s1109_s10  }
  0x15   :  { %s1010_s15 = scalar_lea.hbm %s1262_s1, 1024 }
  0x16   :  { %p1011_p8 = scmp.ne.s32.totalorder %s1262_s1, %s1010_s15  ;;  %p1014_p9 = scmp.lt.u32.totalorder %s1010_s15, %s1262_s1 }
  0x18   :  { %p1016_p10 = pnand %p1014_p9, %p1011_p8 }
  0x1a   :  { %1019 = shalt.err (!%p1016_p10)
}
  0x1b   :  { %s1020_s20 = scalar_lea.vmem %s1151_s24, 1024  ;;  %p1025_p12 = scmp.lt.s32.totalorder %s1151_s24, %s1151_s24 }
  0x1c   :  { %p1021_p11 = scmp.ne.s32.totalorder %s1151_s24, %s1020_s20  ;;  %p1026_p13 = scmp.lt.s32.totalorder %s1020_s20, %s1020_s20 }
  0x1e   :  { %p1027_p0 = por %p1026_p13, %p1025_p12 }
  0x20   :  { %p1028_p1 = pnand %p1027_p0, %p1021_p11 }
  0x22   :  { %1031 = shalt.err (!%p1028_p1)
}
  0x23   :  { %27 = dma.hbm_to_vmem [thread:$0]  %s1262_s1, 1024, %s1151_s24, [#allocation6], %s1108_s9, %s1108_s9, %s1109_s10  }
  0x24   :  { %s1110_s22 = smov [#allocation10]   ;;  %s1111_s25 = smov [#allocation11]  }
  0x25   :  { %s45_s23 = sshll.u32 %s1110_s22, 4  ;;  %s57_s26 = sshll.u32 %s1111_s25, 4  ;;  %s46_s23 = int_to_ptr.vmem [resolvable:$true] %s45_s23  ;;  %s1188_s26 = int_to_ptr.vmem [resolvable:$true] %s57_s26 }
  0x26   :  { %s1032_s29 = scalar_lea.hbm %s1264_s3, 1024 }
  0x27   :  { %p1033_p2 = scmp.ne.s32.totalorder %s1264_s3, %s1032_s29  ;;  %p1036_p3 = scmp.lt.u32.totalorder %s1032_s29, %s1264_s3 }
  0x29   :  { %p1038_p4 = pnand %p1036_p3, %p1033_p2 }
  0x2b   :  { %1041 = shalt.err (!%p1038_p4)
}
  0x2c   :  { %s1042_s1 = scalar_lea.vmem %s46_s23, 1024  ;;  %p1047_p6 = scmp.lt.s32.totalorder %s46_s23, %s46_s23 }
  0x2d   :  { %p1043_p5 = scmp.ne.s32.totalorder %s46_s23, %s1042_s1  ;;  %p1048_p7 = scmp.lt.s32.totalorder %s1042_s1, %s1042_s1 }
  0x2f   :  { %p1049_p8 = por %p1048_p7, %p1047_p6 }
  0x31   :  { %p1050_p9 = pnand %p1049_p8, %p1043_p5 }
  0x33   :  { %1053 = shalt.err (!%p1050_p9)
}
  0x34   :  { %51 = dma.hbm_to_vmem [thread:$0]  %s1264_s3, 1024, %s46_s23, [#allocation9], %s1108_s9, %s1108_s9, %s1109_s10  }
  0x35   :  { %s1054_s15 = scalar_lea.hbm %s1265_s4, 2048 }
  0x36   :  { %p1055_p10 = scmp.ne.s32.totalorder %s1265_s4, %s1054_s15  ;;  %p1058_p11 = scmp.lt.u32.totalorder %s1054_s15, %s1265_s4 }
  0x38   :  { %p1060_p12 = pnand %p1058_p11, %p1055_p10 }
  0x3a   :  { %1063 = shalt.err (!%p1060_p12)
}
  0x3b   :  { %s1064_s20 = scalar_lea.vmem %s1188_s26, 2048  ;;  %p1069_p0 = scmp.lt.s32.totalorder %s1188_s26, %s1188_s26 }
  0x3c   :  { %p1065_p13 = scmp.ne.s32.totalorder %s1188_s26, %s1064_s20  ;;  %p1070_p1 = scmp.lt.s32.totalorder %s1064_s20, %s1064_s20 }
  0x3e   :  { %p1071_p2 = por %p1070_p1, %p1069_p0 }
  0x40   :  { %p1072_p3 = pnand %p1071_p2, %p1065_p13 }
  0x42   :  { %1075 = shalt.err (!%p1072_p3)
}
  0x43   :  { %63 = dma.hbm_to_vmem [thread:$0]  %s1265_s4, 2048, %s1188_s26, [#allocation12], %s1108_s9, %s1108_s9, %s1109_s10  }
  0x44   :  { %1098 = dma.done.wait [#allocation6], 1024  }
  0x45   :  { %1099 = vsyncadd [#allocation6], 4294966272 }
  0x46   :  { %1100 = dma.done.wait [#allocation9], 2048  }
  0x47   :  { %1101 = vsyncadd [#allocation9], 4294965248 }
  0x48   :  { %1102 = dma.done.wait [#allocation12], 2048  }
  0x49   :  { %1103 = vsyncadd [#allocation12], 4294965248  ;;  %v1112_v0 = vmov 0.0   ;;  %p752_p4 = scmp.eq.s32.totalorder %s1261_s0, 0 }
  0x4a   :  { %83 = vst [vmem:[#allocation2] sm:$0xff] %v1112_v0  ;;  %84 = vst [vmem:[#allocation2 + $0x8] sm:$0xff] %v1112_v0  ;;  %v948_v1 = vld [vmem:[#allocation8] sm:$0xff] (!%p752_p4)   ;;  %v949_v2 = vld [vmem:[#allocation8 + $0x8] sm:$0xff] (!%p752_p4)  }
  0x4b   :  { %85 = vst [vmem:[#allocation2 + $0x10] sm:$0xff] %v1112_v0  ;;  %86 = vst [vmem:[#allocation2 + $0x18] sm:$0xff] %v1112_v0  ;;  %104 = sbr.rel (%p752_p4) target bundleno = 333 (0x14d), region = 45  ;;  %874 = vmatprep.subr.bf16.mxu0 (!%p752_p4), %v948_v1  ;;  %906 = vmatprep.subr.bf16.mxu1 (!%p752_p4), %v948_v1  ;;  %v950_v3 = vld [vmem:[#allocation8 + $0x10] sm:$0xff] (!%p752_p4)   ;;  %v951_v4 = vld [vmem:[#allocation8 + $0x18] sm:$0xff] (!%p752_p4)  }
  0x4c   :  { %87 = vst [vmem:[#allocation2 + $0x20] sm:$0xff] %v1112_v0  ;;  %88 = vst [vmem:[#allocation2 + $0x28] sm:$0xff] %v1112_v0  ;;  %875 = vmatpush3.bf16.msra.mxu0 (!%p752_p4), %v948_v1  ;;  %914 = vmatpush3.bf16.msra.mxu1 (!%p752_p4), %v948_v1  ;;  %v956_v5 = vld [vmem:[#allocation5] sm:$0xff] (!%p752_p4)   ;;  %v953_v8 = vld [vmem:[#allocation8 + $0x28] sm:$0xff] (!%p752_p4)  }
  0x4d   :  { %89 = vst [vmem:[#allocation2 + $0x30] sm:$0xff] %v1112_v0  ;;  %90 = vst [vmem:[#allocation2 + $0x38] sm:$0xff] %v1112_v0  ;;  %876 = vmatprep.subr.bf16.mxu0 (!%p752_p4), %v949_v2  ;;  %907 = vmatprep.subr.bf16.mxu1 (!%p752_p4), %v949_v2  ;;  %v957_v6 = vld [vmem:[#allocation5 + $0x20] sm:$0xff] (!%p752_p4)   ;;  %v954_v9 = vld [vmem:[#allocation8 + $0x30] sm:$0xff] (!%p752_p4)  }
  0x4e   :  { %91 = vst [vmem:[#allocation2 + $0x40] sm:$0xff] %v1112_v0  ;;  %92 = vst [vmem:[#allocation2 + $0x48] sm:$0xff] %v1112_v0  ;;  %890 = vmatprep.mubr.bf16.mxu0 (!%p752_p4), %v956_v5  ;;  %v952_v7 = vld [vmem:[#allocation8 + $0x20] sm:$0xff] (!%p752_p4)   ;;  %898 = vmatprep.mubr.bf16.mxu1 (!%p752_p4), %v957_v6  ;;  %v955_v10 = vld [vmem:[#allocation8 + $0x38] sm:$0xff] (!%p752_p4)  }
  0x4f   :  { %93 = vst [vmem:[#allocation2 + $0x50] sm:$0xff] %v1112_v0  ;;  %94 = vst [vmem:[#allocation2 + $0x58] sm:$0xff] %v1112_v0  ;;  %v958_v11 = vld [vmem:[#allocation5 + $0x8] sm:$0xff] (!%p752_p4)   ;;  %v960_v13 = vld [vmem:[#allocation5 + $0x10] sm:$0xff] (!%p752_p4)  }
  0x50   :  { %95 = vst [vmem:[#allocation2 + $0x60] sm:$0xff] %v1112_v0  ;;  %96 = vst [vmem:[#allocation2 + $0x68] sm:$0xff] %v1112_v0  ;;  %877 = vmatpush3.bf16.msra.mxu0 (!%p752_p4), %v949_v2  ;;  %915 = vmatpush3.bf16.msra.mxu1 (!%p752_p4), %v949_v2  ;;  %v959_v12 = vld [vmem:[#allocation5 + $0x28] sm:$0xff] (!%p752_p4)   ;;  %v961_v14 = vld [vmem:[#allocation5 + $0x30] sm:$0xff] (!%p752_p4)  }
  0x51   :  { %97 = vst [vmem:[#allocation2 + $0x70] sm:$0xff] %v1112_v0  ;;  %98 = vst [vmem:[#allocation2 + $0x78] sm:$0xff] %v1112_v0  ;;  %878 = vmatprep.subr.bf16.mxu0 (!%p752_p4), %v950_v3  ;;  %908 = vmatprep.subr.bf16.mxu1 (!%p752_p4), %v950_v3  ;;  %v962_v15 = vld [vmem:[#allocation5 + $0x18] sm:$0xff] (!%p752_p4)   ;;  %v105_v19 = vld [vmem:[#allocation2] sm:$0xff] (!%p752_p4) }
  0x52   :  { %v963_v16 = vld [vmem:[#allocation5 + $0x38] sm:$0xff]   ;;  %v107_v17 = vld [vmem:[#allocation2 + $0x10] sm:$0xff]  ;;  %v106_v29 = vld [vmem:[#allocation2 + $0x8] sm:$0xff] }
  0x53   :  { %v108_v23 = vld [vmem:[#allocation2 + $0x18] sm:$0xff]  ;;  %v109_v43 = vld [vmem:[#allocation2 + $0x20] sm:$0xff]  ;;  %v110_v53 = vld [vmem:[#allocation2 + $0x28] sm:$0xff] }
  0x54   :  { %879 = vmatpush3.bf16.msra.mxu0 %v950_v3  ;;  %916 = vmatpush3.bf16.msra.mxu1 %v950_v3  ;;  %v111_v41 = vld [vmem:[#allocation2 + $0x30] sm:$0xff]  ;;  %v112_v47 = vld [vmem:[#allocation2 + $0x38] sm:$0xff] }
  0x55   :  { %880 = vmatprep.subr.bf16.mxu0 %v951_v4  ;;  %909 = vmatprep.subr.bf16.mxu1 %v951_v4  ;;  %v113_v20 = vld [vmem:[#allocation2 + $0x40] sm:$0xff]  ;;  %v114_v30 = vld [vmem:[#allocation2 + $0x48] sm:$0xff] }
  0x56   :  { %v115_v18 = vld [vmem:[#allocation2 + $0x50] sm:$0xff]  ;;  %v116_v24 = vld [vmem:[#allocation2 + $0x58] sm:$0xff] }
  0x57   :  { %v117_v44 = vld [vmem:[#allocation2 + $0x60] sm:$0xff]  ;;  %v118_v54 = vld [vmem:[#allocation2 + $0x68] sm:$0xff] }
  0x58   :  { %881 = vmatpush3.bf16.msra.mxu0 %v951_v4  ;;  %917 = vmatpush3.bf16.msra.mxu1 %v951_v4  ;;  %v119_v42 = vld [vmem:[#allocation2 + $0x70] sm:$0xff]  ;;  %v120_v48 = vld [vmem:[#allocation2 + $0x78] sm:$0xff] }
  0x59   :  { %882 = vmatprep.subr.bf16.mxu0 %v952_v7  ;;  %910 = vmatprep.subr.bf16.mxu1 %v952_v7 }
  0x5c   :  { %883 = vmatpush3.bf16.msra.mxu0 %v952_v7  ;;  %918 = vmatpush3.bf16.msra.mxu1 %v952_v7 }
  0x5d   :  { %884 = vmatprep.subr.bf16.mxu0 %v953_v8  ;;  %911 = vmatprep.subr.bf16.mxu1 %v953_v8 }
  0x60   :  { %885 = vmatpush3.bf16.msra.mxu0 %v953_v8  ;;  %919 = vmatpush3.bf16.msra.mxu1 %v953_v8 }
  0x61   :  { %886 = vmatprep.subr.bf16.mxu0 %v954_v9  ;;  %912 = vmatprep.subr.bf16.mxu1 %v954_v9 }
  0x64   :  { %887 = vmatpush3.bf16.msra.mxu0 %v954_v9  ;;  %920 = vmatpush3.bf16.msra.mxu1 %v954_v9 }
  0x65   :  { %888 = vmatprep.subr.bf16.mxu0 %v955_v10  ;;  %913 = vmatprep.subr.bf16.mxu1 %v955_v10 }
  0x68   :  { %889 = vmatpush3.bf16.msra.mxu0 %v955_v10  ;;  %921 = vmatpush3.bf16.msra.mxu1 %v955_v10 }
  0x6b   :  { %891 = vmatmul.mubr.bf16.vlgmr.msra.gmra.mrb[0].mxu0 %v958_v11  ;;  %899 = vmatmul.mubr.bf16.vlgmr.msra.gmra.mrb[0].mxu1 %v959_v12 }
  0x6c   :  { %894 = vmatprep.mubr.bf16.mxu0 %v960_v13  ;;  %902 = vmatprep.mubr.bf16.mxu1 %v961_v14 }
  0x73   :  { %895 = vmatmul.mubr.bf16.gmra.mrb[4].mxu0 %v962_v15  ;;  %903 = vmatmul.mubr.bf16.gmra.mrb[4].mxu1 %v963_v16 }
 0x13e   :  { %v892_v21 = vpop.f32.mrb[0].mxu0  ;;  %v900_v22 = vpop.f32.mrb[0].mxu1 }
 0x13f   :  { %v348_v25 = vadd.f32 %v892_v21, %v107_v17  ;;  %v356_v26 = vadd.f32 %v900_v22, %v115_v18  ;;  %v283_v27 = vpop.f32.mrb[1].mxu0  ;;  %v315_v28 = vpop.f32.mrb[1].mxu1 }
 0x140   :  { %v346_v31 = vadd.f32 %v283_v27, %v105_v19  ;;  %v354_v32 = vadd.f32 %v315_v28, %v113_v20  ;;  %v893_v33 = vpop.f32.mrb[2].mxu0  ;;  %v901_v34 = vpop.f32.mrb[2].mxu1 }
 0x141   :  { %364 = vst [vmem:[#allocation2 + $0x10] sm:$0xff] %v348_v25  ;;  %372 = vst [vmem:[#allocation2 + $0x50] sm:$0xff] %v356_v26  ;;  %v349_v35 = vadd.f32 %v893_v33, %v108_v23  ;;  %v357_v36 = vadd.f32 %v901_v34, %v116_v24  ;;  %v286_v37 = vpop.f32.mrb[3].mxu0  ;;  %v318_v38 = vpop.f32.mrb[3].mxu1 }
 0x142   :  { %362 = vst [vmem:[#allocation2] sm:$0xff] %v346_v31  ;;  %370 = vst [vmem:[#allocation2 + $0x40] sm:$0xff] %v354_v32  ;;  %v347_v39 = vadd.f32 %v286_v37, %v106_v29  ;;  %v355_v40 = vadd.f32 %v318_v38, %v114_v30 }
 0x143   :  { %365 = vst [vmem:[#allocation2 + $0x18] sm:$0xff] %v349_v35  ;;  %373 = vst [vmem:[#allocation2 + $0x58] sm:$0xff] %v357_v36 }
 0x144   :  { %363 = vst [vmem:[#allocation2 + $0x8] sm:$0xff] %v347_v39  ;;  %371 = vst [vmem:[#allocation2 + $0x48] sm:$0xff] %v355_v40 }
 0x146   :  { %v896_v45 = vpop.f32.mrb[4].mxu0  ;;  %v904_v46 = vpop.f32.mrb[4].mxu1 }
 0x147   :  { %v352_v49 = vadd.f32 %v896_v45, %v111_v41  ;;  %v360_v50 = vadd.f32 %v904_v46, %v119_v42  ;;  %v299_v51 = vpop.f32.mrb[5].mxu0  ;;  %v331_v52 = vpop.f32.mrb[5].mxu1 }
 0x148   :  { %v350_v55 = vadd.f32 %v299_v51, %v109_v43  ;;  %v358_v56 = vadd.f32 %v331_v52, %v117_v44  ;;  %v897_v57 = vpop.f32.mrb[6].mxu0  ;;  %v905_v58 = vpop.f32.mrb[6].mxu1 }
 0x149   :  { %368 = vst [vmem:[#allocation2 + $0x30] sm:$0xff] %v352_v49  ;;  %376 = vst [vmem:[#allocation2 + $0x70] sm:$0xff] %v360_v50  ;;  %v353_v59 = vadd.f32 %v897_v57, %v112_v47  ;;  %v361_v60 = vadd.f32 %v905_v58, %v120_v48  ;;  %v302_v61 = vpop.f32.mrb[7].mxu0  ;;  %v334_v62 = vpop.f32.mrb[7].mxu1 }
 0x14a   :  { %366 = vst [vmem:[#allocation2 + $0x20] sm:$0xff] %v350_v55  ;;  %374 = vst [vmem:[#allocation2 + $0x60] sm:$0xff] %v358_v56  ;;  %v351_v63 = vadd.f32 %v302_v61, %v110_v53  ;;  %v359_v0 = vadd.f32 %v334_v62, %v118_v54 }
 0x14b   :  { %369 = vst [vmem:[#allocation2 + $0x38] sm:$0xff] %v353_v59  ;;  %377 = vst [vmem:[#allocation2 + $0x78] sm:$0xff] %v361_v60 }
 0x14c   :  { %367 = vst [vmem:[#allocation2 + $0x28] sm:$0xff] %v351_v63  ;;  %375 = vst [vmem:[#allocation2 + $0x68] sm:$0xff] %v359_v0 }
 0x14d PF:  { %v964_v1 = vld [vmem:[#allocation11 + $0x40] sm:$0xff]   ;;  %v966_v3 = vld [vmem:[#allocation11 + $0x48] sm:$0xff]   ;;  %v968_v5 = vld [vmem:[#allocation11 + $0x50] sm:$0xff]  }
 0x14e   :  { %v965_v2 = vld [vmem:[#allocation11] sm:$0xff]   ;;  %810 = vmatprep.subr.bf16.mxu0 %v964_v1  ;;  %922 = vmatprep.subr.bf16.mxu1 %v964_v1  ;;  %v967_v4 = vld [vmem:[#allocation11 + $0x8] sm:$0xff]   ;;  %v969_v6 = vld [vmem:[#allocation11 + $0x10] sm:$0xff]  }
 0x14f   :  { %811 = vmatpush3.bf16.msra.mxu0 %v965_v2  ;;  %930 = vmatpush3.bf16.msra.mxu1 %v965_v2  ;;  %v970_v7 = vld [vmem:[#allocation11 + $0x58] sm:$0xff]   ;;  %v972_v9 = vld [vmem:[#allocation11 + $0x60] sm:$0xff]   ;;  %v974_v11 = vld [vmem:[#allocation11 + $0x68] sm:$0xff]  }
 0x150   :  { %812 = vmatprep.subr.bf16.mxu0 %v966_v3  ;;  %923 = vmatprep.subr.bf16.mxu1 %v966_v3  ;;  %v971_v8 = vld [vmem:[#allocation11 + $0x18] sm:$0xff]   ;;  %v973_v10 = vld [vmem:[#allocation11 + $0x20] sm:$0xff]   ;;  %v975_v14 = vld [vmem:[#allocation11 + $0x28] sm:$0xff]  }
 0x151   :  { %v980_v12 = vld [vmem:[#allocation10] sm:$0xff]   ;;  %v976_v15 = vld [vmem:[#allocation11 + $0x70] sm:$0xff]   ;;  %v978_v17 = vld [vmem:[#allocation11 + $0x78] sm:$0xff]  }
 0x152   :  { %v981_v13 = vld [vmem:[#allocation10 + $0x20] sm:$0xff]   ;;  %636 = vmatprep.mubr.bf16.mxu0 %v980_v12  ;;  %v977_v16 = vld [vmem:[#allocation11 + $0x30] sm:$0xff]   ;;  %v979_v18 = vld [vmem:[#allocation11 + $0x38] sm:$0xff]  }
 0x153   :  { %813 = vmatpush3.bf16.msra.mxu0 %v967_v4  ;;  %931 = vmatpush3.bf16.msra.mxu1 %v967_v4  ;;  %v381_v19 = vld [vmem:[#allocation2] sm:$0xff]  ;;  %v382_v20 = vld [vmem:[#allocation2 + $0x8] sm:$0xff]  ;;  %v383_v27 = vld [vmem:[#allocation2 + $0x10] sm:$0xff] }
 0x154   :  { %814 = vmatprep.subr.bf16.mxu0 %v968_v5  ;;  %924 = vmatprep.subr.bf16.mxu1 %v968_v5  ;;  %v389_v21 = vld [vmem:[#allocation2 + $0x40] sm:$0xff]  ;;  %v390_v22 = vld [vmem:[#allocation2 + $0x48] sm:$0xff]  ;;  %v397_v23 = vpack.c.bf16 %v382_v20, %v381_v19  ;;  %v384_v28 = vld [vmem:[#allocation2 + $0x18] sm:$0xff] }
 0x155   :  { %668 = vmatprep.mubr.bf16.mxu1 %v981_v13  ;;  %v401_v24 = vpack.c.bf16 %v390_v22, %v389_v21  ;;  %v982_v25 = vld [vmem:[#allocation10 + $0x8] sm:$0xff]   ;;  %v391_v29 = vld [vmem:[#allocation2 + $0x50] sm:$0xff]  ;;  %v392_v30 = vld [vmem:[#allocation2 + $0x58] sm:$0xff]  ;;  %v398_v31 = vpack.c.bf16 %v384_v28, %v383_v27 }
 0x156   :  { %v983_v26 = vld [vmem:[#allocation10 + $0x28] sm:$0xff]   ;;  %v402_v32 = vpack.c.bf16 %v392_v30, %v391_v29  ;;  %v984_v33 = vld [vmem:[#allocation10 + $0x10] sm:$0xff]   ;;  %v385_v35 = vld [vmem:[#allocation2 + $0x20] sm:$0xff] }
 0x157   :  { %815 = vmatpush3.bf16.msra.mxu0 %v969_v6  ;;  %932 = vmatpush3.bf16.msra.mxu1 %v969_v6  ;;  %v985_v34 = vld [vmem:[#allocation10 + $0x30] sm:$0xff]   ;;  %v386_v36 = vld [vmem:[#allocation2 + $0x28] sm:$0xff]  ;;  %v393_v37 = vld [vmem:[#allocation2 + $0x60] sm:$0xff] }
 0x158   :  { %816 = vmatprep.subr.bf16.mxu0 %v970_v7  ;;  %925 = vmatprep.subr.bf16.mxu1 %v970_v7  ;;  %v394_v38 = vld [vmem:[#allocation2 + $0x68] sm:$0xff]  ;;  %v399_v39 = vpack.c.bf16 %v386_v36, %v385_v35  ;;  %v986_v41 = vld [vmem:[#allocation10 + $0x18] sm:$0xff]   ;;  %v387_v43 = vld [vmem:[#allocation2 + $0x30] sm:$0xff] }
 0x159   :  { %v403_v40 = vpack.c.bf16 %v394_v38, %v393_v37  ;;  %v987_v42 = vld [vmem:[#allocation10 + $0x38] sm:$0xff]   ;;  %v395_v45 = vld [vmem:[#allocation2 + $0x70] sm:$0xff]  ;;  %v1231_v51 = vld [vmem:[%s1266_s5] ss:$0 sm:$0xff]  ;;  %s1113_s5 = smov [#allocation13]  }
 0x15a   :  { %v388_v44 = vld [vmem:[#allocation2 + $0x38] sm:$0xff]  ;;  %s738_s21 = sshll.u32 %s1113_s5, 4  ;;  %s739_s21 = int_to_ptr.vmem [resolvable:$true] %s738_s21 }
 0x15b   :  { %817 = vmatpush3.bf16.msra.mxu0 %v971_v8  ;;  %933 = vmatpush3.bf16.msra.mxu1 %v971_v8  ;;  %v396_v46 = vld [vmem:[#allocation2 + $0x78] sm:$0xff]  ;;  %v400_v47 = vpack.c.bf16 %v388_v44, %v387_v43  ;;  %s1076_s22 = scalar_lea.vmem %s739_s21, 2048  ;;  %p1081_p6 = scmp.lt.s32.totalorder %s739_s21, %s739_s21 }
 0x15c   :  { %818 = vmatprep.subr.bf16.mxu0 %v972_v9  ;;  %926 = vmatprep.subr.bf16.mxu1 %v972_v9  ;;  %v404_v48 = vpack.c.bf16 %v396_v46, %v395_v45  ;;  %p1077_p5 = scmp.ne.s32.totalorder %s739_s21, %s1076_s22  ;;  %p1082_p7 = scmp.lt.s32.totalorder %s1076_s22, %s1076_s22 }
 0x15e   :  { %p1083_p8 = por %p1082_p7, %p1081_p6 }
 0x15f   :  { %819 = vmatpush3.bf16.msra.mxu0 %v973_v10  ;;  %934 = vmatpush3.bf16.msra.mxu1 %v973_v10 }
 0x160   :  { %820 = vmatprep.subr.bf16.mxu0 %v974_v11  ;;  %927 = vmatprep.subr.bf16.mxu1 %v974_v11  ;;  %p1084_p9 = pnand %p1083_p8, %p1077_p5 }
 0x163   :  { %821 = vmatpush3.bf16.msra.mxu0 %v975_v14  ;;  %935 = vmatpush3.bf16.msra.mxu1 %v975_v14 }
 0x164   :  { %822 = vmatprep.subr.bf16.mxu0 %v976_v15  ;;  %928 = vmatprep.subr.bf16.mxu1 %v976_v15 }
 0x167   :  { %823 = vmatpush3.bf16.msra.mxu0 %v977_v16  ;;  %936 = vmatpush3.bf16.msra.mxu1 %v977_v16 }
 0x168   :  { %824 = vmatprep.subr.bf16.mxu0 %v978_v17  ;;  %929 = vmatprep.subr.bf16.mxu1 %v978_v17 }
 0x16b   :  { %825 = vmatpush3.bf16.msra.mxu0 %v979_v18  ;;  %937 = vmatpush3.bf16.msra.mxu1 %v979_v18 }
 0x16e   :  { %637 = vmatmul.mubr.bf16.vlgmr.msra.gmra.mrb[0].mxu0 %v397_v23  ;;  %669 = vmatmul.mubr.bf16.vlgmr.msra.gmra.mrb[0].mxu1 %v401_v24 }
 0x16f   :  { %644 = vmatprep.mubr.bf16.mxu0 %v982_v25  ;;  %676 = vmatprep.mubr.bf16.mxu1 %v983_v26 }
 0x176   :  { %645 = vmatmul.mubr.bf16.gmra.mrb[4].mxu0 %v398_v31  ;;  %677 = vmatmul.mubr.bf16.gmra.mrb[4].mxu1 %v402_v32 }
 0x177   :  { %652 = vmatprep.mubr.bf16.mxu0 %v984_v33  ;;  %684 = vmatprep.mubr.bf16.mxu1 %v985_v34 }
 0x17e   :  { %653 = vmatmul.mubr.bf16.gmra.mrb[8].mxu0 %v399_v39  ;;  %685 = vmatmul.mubr.bf16.gmra.mrb[8].mxu1 %v403_v40 }
 0x17f   :  { %660 = vmatprep.mubr.bf16.mxu0 %v986_v41  ;;  %692 = vmatprep.mubr.bf16.mxu1 %v987_v42 }
 0x186   :  { %661 = vmatmul.mubr.bf16.gmra.mrb[12].mxu0 %v400_v47  ;;  %693 = vmatmul.mubr.bf16.gmra.mrb[12].mxu1 %v404_v48 }
 0x241   :  { %v826_v49 = vpop.f32.mrb[0].mxu0  ;;  %v850_v50 = vpop.f32.mrb[0].mxu1 }
 0x242   :  { %v827_v52 = vpop.f32.mrb[1].mxu0  ;;  %v851_v53 = vpop.f32.mrb[1].mxu1 }
 0x243   :  { %v828_v54 = vadd.f32 %v827_v52, %v826_v49  ;;  %v852_v55 = vadd.f32 %v851_v53, %v850_v50  ;;  %v829_v56 = vpop.f32.mrb[2].mxu0  ;;  %v853_v57 = vpop.f32.mrb[2].mxu1 }
 0x244   :  { %v830_v58 = vpop.f32.mrb[3].mxu0  ;;  %v854_v59 = vpop.f32.mrb[3].mxu1 }
 0x245   :  { %v639_v60 = vadd.f32 %v828_v54, %v1231_v51  ;;  %v671_v61 = vadd.f32 %v852_v55, %v1231_v51  ;;  %v831_v62 = vadd.f32 %v830_v58, %v829_v56  ;;  %v855_v63 = vadd.f32 %v854_v59, %v853_v57 }
 0x247   :  { %v701_v0 = vmax.f32 %v639_v60, 0.0  ;;  %v709_v1 = vmax.f32 %v671_v61, 0.0  ;;  %v642_v2 = vadd.f32 %v831_v62, %v1231_v51  ;;  %v674_v3 = vadd.f32 %v855_v63, %v1231_v51 }
 0x249   :  { %717 = vst [vmem:[#allocation13] sm:$0xff] %v701_v0  ;;  %725 = vst [vmem:[#allocation13 + $0x40] sm:$0xff] %v709_v1  ;;  %v702_v4 = vmax.f32 %v642_v2, 0.0  ;;  %v710_v5 = vmax.f32 %v674_v3, 0.0  ;;  %v832_v6 = vpop.f32.mrb[4].mxu0  ;;  %v856_v7 = vpop.f32.mrb[4].mxu1 }
 0x24a   :  { %v833_v8 = vpop.f32.mrb[5].mxu0  ;;  %v857_v9 = vpop.f32.mrb[5].mxu1 }
 0x24b   :  { %718 = vst [vmem:[#allocation13 + $0x8] sm:$0xff] %v702_v4  ;;  %726 = vst [vmem:[#allocation13 + $0x48] sm:$0xff] %v710_v5  ;;  %v834_v10 = vadd.f32 %v833_v8, %v832_v6  ;;  %v858_v11 = vadd.f32 %v857_v9, %v856_v7  ;;  %v835_v12 = vpop.f32.mrb[6].mxu0  ;;  %v859_v13 = vpop.f32.mrb[6].mxu1 }
 0x24c   :  { %v836_v14 = vpop.f32.mrb[7].mxu0  ;;  %v860_v15 = vpop.f32.mrb[7].mxu1 }
 0x24d   :  { %v647_v16 = vadd.f32 %v834_v10, %v1231_v51  ;;  %v679_v17 = vadd.f32 %v858_v11, %v1231_v51  ;;  %v837_v18 = vadd.f32 %v836_v14, %v835_v12  ;;  %v861_v19 = vadd.f32 %v860_v15, %v859_v13 }
 0x24f   :  { %v703_v20 = vmax.f32 %v647_v16, 0.0  ;;  %v711_v21 = vmax.f32 %v679_v17, 0.0  ;;  %v650_v22 = vadd.f32 %v837_v18, %v1231_v51  ;;  %v682_v23 = vadd.f32 %v861_v19, %v1231_v51 }
 0x251   :  { %719 = vst [vmem:[#allocation13 + $0x10] sm:$0xff] %v703_v20  ;;  %727 = vst [vmem:[#allocation13 + $0x50] sm:$0xff] %v711_v21  ;;  %v704_v24 = vmax.f32 %v650_v22, 0.0  ;;  %v712_v25 = vmax.f32 %v682_v23, 0.0  ;;  %v838_v26 = vpop.f32.mrb[8].mxu0  ;;  %v862_v27 = vpop.f32.mrb[8].mxu1 }
 0x252   :  { %v839_v28 = vpop.f32.mrb[9].mxu0  ;;  %v863_v29 = vpop.f32.mrb[9].mxu1 }
 0x253   :  { %720 = vst [vmem:[#allocation13 + $0x18] sm:$0xff] %v704_v24  ;;  %728 = vst [vmem:[#allocation13 + $0x58] sm:$0xff] %v712_v25  ;;  %v840_v30 = vadd.f32 %v839_v28, %v838_v26  ;;  %v864_v31 = vadd.f32 %v863_v29, %v862_v27  ;;  %v841_v32 = vpop.f32.mrb[10].mxu0  ;;  %v865_v33 = vpop.f32.mrb[10].mxu1 }
 0x254   :  { %v842_v34 = vpop.f32.mrb[11].mxu0  ;;  %v866_v35 = vpop.f32.mrb[11].mxu1 }
 0x255   :  { %v655_v36 = vadd.f32 %v840_v30, %v1231_v51  ;;  %v687_v37 = vadd.f32 %v864_v31, %v1231_v51  ;;  %v843_v38 = vadd.f32 %v842_v34, %v841_v32  ;;  %v867_v39 = vadd.f32 %v866_v35, %v865_v33 }
 0x257   :  { %v705_v40 = vmax.f32 %v655_v36, 0.0  ;;  %v713_v41 = vmax.f32 %v687_v37, 0.0  ;;  %v658_v42 = vadd.f32 %v843_v38, %v1231_v51  ;;  %v690_v43 = vadd.f32 %v867_v39, %v1231_v51 }
 0x259   :  { %721 = vst [vmem:[#allocation13 + $0x20] sm:$0xff] %v705_v40  ;;  %729 = vst [vmem:[#allocation13 + $0x60] sm:$0xff] %v713_v41  ;;  %v706_v44 = vmax.f32 %v658_v42, 0.0  ;;  %v714_v45 = vmax.f32 %v690_v43, 0.0  ;;  %v844_v46 = vpop.f32.mrb[12].mxu0  ;;  %v868_v47 = vpop.f32.mrb[12].mxu1 }
 0x25a   :  { %v845_v48 = vpop.f32.mrb[13].mxu0  ;;  %v869_v49 = vpop.f32.mrb[13].mxu1 }
 0x25b   :  { %722 = vst [vmem:[#allocation13 + $0x28] sm:$0xff] %v706_v44  ;;  %730 = vst [vmem:[#allocation13 + $0x68] sm:$0xff] %v714_v45  ;;  %v846_v50 = vadd.f32 %v845_v48, %v844_v46  ;;  %v870_v52 = vadd.f32 %v869_v49, %v868_v47  ;;  %v847_v53 = vpop.f32.mrb[14].mxu0  ;;  %v871_v54 = vpop.f32.mrb[14].mxu1 }
 0x25c   :  { %v848_v55 = vpop.f32.mrb[15].mxu0  ;;  %v872_v56 = vpop.f32.mrb[15].mxu1 }
 0x25d   :  { %v663_v57 = vadd.f32 %v846_v50, %v1231_v51  ;;  %v695_v58 = vadd.f32 %v870_v52, %v1231_v51  ;;  %v849_v59 = vadd.f32 %v848_v55, %v847_v53  ;;  %v873_v60 = vadd.f32 %v872_v56, %v871_v54 }
 0x25f   :  { %v707_v61 = vmax.f32 %v663_v57, 0.0  ;;  %v715_v62 = vmax.f32 %v695_v58, 0.0  ;;  %v666_v63 = vadd.f32 %v849_v59, %v1231_v51  ;;  %v698_v0 = vadd.f32 %v873_v60, %v1231_v51 }
 0x261   :  { %723 = vst [vmem:[#allocation13 + $0x30] sm:$0xff] %v707_v61  ;;  %731 = vst [vmem:[#allocation13 + $0x70] sm:$0xff] %v715_v62  ;;  %v708_v1 = vmax.f32 %v666_v63, 0.0  ;;  %v716_v2 = vmax.f32 %v698_v0, 0.0 }
 0x263   :  { %724 = vst [vmem:[#allocation13 + $0x38] sm:$0xff] %v708_v1  ;;  %732 = vst [vmem:[#allocation13 + $0x78] sm:$0xff] %v716_v2 }
 0x264   :  { %1087 = shalt.err (!%p1084_p9)
}
 0x265   :  { %s1088_s26 = scalar_lea.hbm %s1267_s6, 2048 }
 0x266   :  { %p1089_p10 = scmp.ne.s32.totalorder %s1267_s6, %s1088_s26  ;;  %p1092_p11 = scmp.lt.u32.totalorder %s1088_s26, %s1267_s6 }
 0x268   :  { %p1094_p12 = pnand %p1092_p11, %p1089_p10 }
 0x26a   :  { %1097 = shalt.err (!%p1094_p12)
}
 0x26b   :  { %s1114_s7 = smov 128   ;;  %s1115_s8 = smov 8  }
 0x26c   :  { %744 = dma.vmem_to_hbm [thread:$0]  %s739_s21, 2048, %s1267_s6, [#allocation7], %s1114_s7, %s1114_s7, %s1115_s8  }
 0x26d   :  { %1104 = dma.done.wait [#allocation7], 2048  }
 0x26e   :  { %1105 = vsyncadd [#allocation7], 4294965248 }
 0x26f   :  { %748 = vsyncpa [#allocation6], 1 }
 0x270   :  { %749 = vsyncpa [#allocation9], 1 }
 0x271   :  { %750 = vsyncpa [#allocation12], 1 }
 0x272   :  { %751 = vsyncpa [#allocation7], 1 }

</bundles_post_ra>
